<compile_context>
chip_gen: v7x
topology: tpu7x:2x2x1
jax: 0.10.0
libtpu: 0.0.40
codegen_flags: <defaults>
</compile_context>

<pallas_src>
import jax
import jax.numpy as jnp
from jax.experimental import pallas as pl
from jax.experimental.pallas import tpu as pltpu


def _textsnake_head_kernel(p_ref, w1_ref, w2_ref, o_ref):
    """One lane tile of the fused (B*H*W) axis per grid step.

    p_ref  : (K_pad, T)    bf16  im2col patches (+ ones row, zero pad rows)
    w1_ref : (CHP, K_pad)  bf16  3x3 conv weights, b1 folded in; row CH is a
                                 "bias channel" (h[CH] == 1 after ReLU)
    w2_ref : (CO_pad, CHP) bf16  1x1 conv weights, b2 folded into column CH
    o_ref  : (CO_pad, T)   f32   TextSnake maps, lane-dense on B*H*W
    """
    # 3x3 conv (+b1) as one MXU matmul, f32 accumulation in registers.
    h = jnp.dot(w1_ref[...], p_ref[...],
                preferred_element_type=jnp.float32)          # (CHP, T) f32
    h = jnp.maximum(h, 0.0)                                  # f32 VPU ReLU
    # 1x1 conv head (+b2 via the bias channel), MXU, f32 accumulation.
    out = jnp.dot(w2_ref[...], h.astype(jnp.bfloat16),
                  preferred_element_type=jnp.float32)        # (CO_pad, T) f32
    o_ref[...] = out.astype(o_ref.dtype)


def _pick_lane_tile(total, max_tile=8192):
    """Largest multiple-of-128 divisor of `total` (<= max_tile), preferring
    >= 2 grid steps so both v7x TensorCores get parallel work."""
    tile = 128
    for t in range(128, min(total, max_tile) + 1, 128):
        if total % t == 0:
            tile = t
    if tile == total and total >= 256 and (total // 2) % 128 == 0:
        tile = total // 2
    return tile


def textsnake_forward(x_tuple, params):
    """Mirrors TextSnakeWrapper.forward: takes a tuple/list, uses element 0."""
    x = x_tuple[0]                                  # (B, C, H, W)  NCHW
    w1, b1, w2, b2 = params                         # (3,3,C,CH),(CH,),(CH,CO),(CO,)
    B, C, H, W = x.shape
    CH = w1.shape[-1]
    CO = w2.shape[-1]
    HW = H * W

    K = 9 * C + 1                                   # 9 taps * Cin + bias row
    K_pad = ((K + 15) // 16) * 16                   # bf16 sublane-clean K
    CHP = ((CH + 1 + 15) // 16) * 16                # hidden + bias channel
    CO_pad = max(8, ((CO + 7) // 8) * 8)            # dense output sublanes

    # --- wrapper-side im2col, bf16 from the start, batch fused into lanes.
    # Patch row (dy*3+dx)*C + c holds the (dy,dx)-shifted view of channel c;
    # row 9C is ones (carries b1), remaining rows up to K_pad are zeros.
    xb = x.astype(jnp.bfloat16)
    xp = jnp.pad(xb, ((0, 0), (0, 0), (1, 1), (1, 1)))
    taps = [xp[:, :, dy:dy + H, dx:dx + W]
            for dy in range(3) for dx in range(3)]            # 9 x (B,C,H,W)
    pat = jnp.stack(taps, axis=0)                             # (9,B,C,H,W)
    pat = jnp.transpose(pat, (0, 2, 1, 3, 4)).reshape(9 * C, B * HW)

    total = B * HW
    total_pad = ((total + 127) // 128) * 128
    rows = [pat, jnp.ones((1, total), jnp.bfloat16)]
    if K_pad > K:
        rows.append(jnp.zeros((K_pad - K, total), jnp.bfloat16))
    patches = jnp.concatenate(rows, axis=0)                   # (K_pad, total)
    if total_pad > total:
        patches = jnp.pad(patches, ((0, 0), (0, total_pad - total)))

    # --- weights: output-channel major, biases folded in, bf16 for the MXU.
    w1_full = jnp.zeros((CHP, K_pad), jnp.float32)
    w1_full = w1_full.at[:CH, :9 * C].set(w1.reshape(9 * C, CH).T)
    w1_full = w1_full.at[:CH, 9 * C].set(b1)           # b1 rides the ones row
    w1_full = w1_full.at[CH, 9 * C].set(1.0)           # bias channel: h[CH]=1
    w1_full = w1_full.astype(jnp.bfloat16)

    w2_full = jnp.zeros((CO_pad, CHP), jnp.float32)
    w2_full = w2_full.at[:CO, :CH].set(w2.T)
    w2_full = w2_full.at[:CO, CH].set(b2)               # b2 rides bias channel
    w2_full = w2_full.astype(jnp.bfloat16)

    # --- grid over lane tiles of the fused B*HW axis; weights stay resident.
    T = _pick_lane_tile(total_pad)
    num_tiles = total_pad // T

    patch_spec = pl.BlockSpec((K_pad, T), lambda i: (0, i))
    if num_tiles >= 4:
        # long stream: extra pipeline depth hides exposed DMA latency
        patch_spec = pl.BlockSpec((K_pad, T), lambda i: (0, i),
                                  pipeline_mode=pl.Buffered(3))

    out_flat = pl.pallas_call(
        _textsnake_head_kernel,
        out_shape=jax.ShapeDtypeStruct((CO_pad, total_pad), jnp.float32),
        grid_spec=pltpu.PrefetchScalarGridSpec(
            num_scalar_prefetch=0,
            grid=(num_tiles,),
            in_specs=[
                patch_spec,
                pl.BlockSpec((CHP, K_pad), lambda i: (0, 0)),
                pl.BlockSpec((CO_pad, CHP), lambda i: (0, 0)),
            ],
            out_specs=pl.BlockSpec((CO_pad, T), lambda i: (0, i)),
        ),
        compiler_params=pltpu.CompilerParams(
            dimension_semantics=("parallel",),
            vmem_limit_bytes=32 * 1024 * 1024),
    )(patches, w1_full, w2_full)

    # (CO_pad, B*H*W) -> (B, CO, H, W); tiny wrapper-side transpose.
    out = out_flat[:CO, :total].reshape(CO, B, H, W)
    return jnp.transpose(out, (1, 0, 2, 3))


def _reference(x, params):
    """Pure-JAX reference (lax.conv) with matching bf16-input / f32-acc precision."""
    w1, b1, w2, b2 = params
    CH = w1.shape[-1]
    CO = w2.shape[-1]
    xb = x.astype(jnp.bfloat16)
    w1b = jnp.transpose(w1, (3, 2, 0, 1)).astype(jnp.bfloat16)   # OIHW
    h = jax.lax.conv_general_dilated(
        xb, w1b, (1, 1), "SAME",
        dimension_numbers=("NCHW", "OIHW", "NCHW"),
        preferred_element_type=jnp.float32) + b1.reshape(1, CH, 1, 1)
    h = jnp.maximum(h, 0.0)
    w2b = w2.T.astype(jnp.bfloat16)[:, :, None, None]            # (CO, CH, 1, 1)
    out = jax.lax.conv_general_dilated(
        h.astype(jnp.bfloat16), w2b, (1, 1), "SAME",
        dimension_numbers=("NCHW", "OIHW", "NCHW"),
        preferred_element_type=jnp.float32) + b2.reshape(1, CO, 1, 1)
    return out


if __name__ == "__main__":
    key = jax.random.PRNGKey(0)
    k1, k2, k3, k4, kx = jax.random.split(key, 5)

    B, C, H, W = 2, 3, 16, 16      # small RGB images
    CH, CO = 32, 5                 # hidden channels, 5 TextSnake maps

    x = jax.random.normal(kx, (B, C, H, W), jnp.float32)
    # deterministic synthetic parameters (shapes implied by the conv head)
    w1 = 0.1 * jax.random.normal(k1, (3, 3, C, CH), jnp.float32)
    b1 = 0.01 * jax.random.normal(k2, (CH,), jnp.float32)
    w2 = 0.1 * jax.random.normal(k3, (CH, CO), jnp.float32)
    b2 = 0.01 * jax.random.normal(k4, (CO,), jnp.float32)
    params = (w1, b1, w2, b2)

    out = textsnake_forward((x,), params)          # wrapper takes x[0]
    out = jax.block_until_ready(out)

    assert out.shape == (B, CO, H, W), out.shape
    ref = _reference(x, params)
    max_err = float(jnp.max(jnp.abs(out - ref)))
    assert jnp.allclose(out, ref, atol=1e-2, rtol=1e-2), max_err

    print("KERNEL_OK")
</pallas_src>

<mosaic_0001>
module attributes {stable_mosaic.version = 11 : i64} {
  func.func @_textsnake_head_kernel(%arg0: i32, %arg1: memref<32x256xbf16, #tpu.memory_space<vmem>>, %arg2: memref<48x32xbf16, #tpu.memory_space<vmem>>, %arg3: memref<8x48xbf16, #tpu.memory_space<vmem>>, %arg4: memref<8x256xf32, #tpu.memory_space<vmem>>) attributes {dimension_semantics = [#tpu.dimension_semantics<parallel>], iteration_bounds = array<i64: 2>, scalar_prefetch = 0 : i64, scratch_operands = 0 : i64, tpu.core_type = #tpu.core_type<tc>, window_params = [{transform_indices = @transform_0, window_bounds = array<i64: 32, 256>}, {pipeline_mode = #tpu.pipeline_mode<synchronous>, transform_indices = @transform_1, window_bounds = array<i64: 48, 32>}, {pipeline_mode = #tpu.pipeline_mode<synchronous>, transform_indices = @transform_2, window_bounds = array<i64: 8, 48>}, {transform_indices = @transform_3, window_bounds = array<i64: 8, 256>}]} {
    %c0 = arith.constant 0 : index
    %c0_0 = arith.constant 0 : index
    %0 = vector.load %arg2[%c0, %c0_0] : memref<48x32xbf16, #tpu.memory_space<vmem>>, vector<48x32xbf16>
    %c0_1 = arith.constant 0 : index
    %c0_2 = arith.constant 0 : index
    %1 = vector.load %arg1[%c0_1, %c0_2] : memref<32x256xbf16, #tpu.memory_space<vmem>>, vector<32x256xbf16>
    %cst = arith.constant dense<0.000000e+00> : vector<48x256xf32>
    %2 = tpu.matmul %0, %1, %cst {dimension_numbers = #tpu.dot_dimension_numbers<[1], [0], [0], [1], [0, 0, 1, 1], [], []>} : vector<48x32xbf16>, vector<32x256xbf16>, vector<48x256xf32> -> vector<48x256xf32>
    %cst_3 = arith.constant 0.000000e+00 : f32
    %3 = vector.broadcast %cst_3 : f32 to vector<48x256xf32>
    %4 = arith.maximumf %2, %3 : vector<48x256xf32>
    %c0_4 = arith.constant 0 : index
    %c0_5 = arith.constant 0 : index
    %5 = vector.load %arg3[%c0_4, %c0_5] : memref<8x48xbf16, #tpu.memory_space<vmem>>, vector<8x48xbf16>
    %6 = arith.truncf %4 : vector<48x256xf32> to vector<48x256xbf16>
    %cst_6 = arith.constant dense<0.000000e+00> : vector<8x256xf32>
    %7 = tpu.matmul %5, %6, %cst_6 {dimension_numbers = #tpu.dot_dimension_numbers<[1], [0], [0], [1], [0, 0, 1, 1], [], []>} : vector<8x48xbf16>, vector<48x256xbf16>, vector<8x256xf32> -> vector<8x256xf32>
    %c0_7 = arith.constant 0 : index
    %c0_8 = arith.constant 0 : index
    %8 = vector.load %arg4[%c0_7, %c0_8] : memref<8x256xf32, #tpu.memory_space<vmem>>, vector<8x256xf32>
    tpu.vector_store %arg4[%c0_7, %c0_8], %7 {strides = array<i32>} : memref<8x256xf32, #tpu.memory_space<vmem>>, vector<8x256xf32>,
    return
  }
  func.func @transform_0(%arg0: i32) -> (i32, i32) {
    %c0_i32 = arith.constant 0 : i32
    %c0_i32_0 = arith.constant 0 : i32
    return %c0_i32, %arg0 : i32, i32
  }
  func.func @transform_1(%arg0: i32) -> (i32, i32) {
    %c0_i32 = arith.constant 0 : i32
    %c0_i32_0 = arith.constant 0 : i32
    %c0_i32_1 = arith.constant 0 : i32
    return %c0_i32, %c0_i32_0 : i32, i32
  }
  func.func @transform_2(%arg0: i32) -> (i32, i32) {
    %c0_i32 = arith.constant 0 : i32
    %c0_i32_0 = arith.constant 0 : i32
    %c0_i32_1 = arith.constant 0 : i32
    return %c0_i32, %c0_i32_0 : i32, i32
  }
  func.func @transform_3(%arg0: i32) -> (i32, i32) {
    %c0_i32 = arith.constant 0 : i32
    %c0_i32_0 = arith.constant 0 : i32
    return %c0_i32, %arg0 : i32, i32
  }
}

</mosaic_0001>

<bundles_post_ra>
// kernel: tpu_custom_call.1
= control target key start
LH: loop header
LB: loop body
LE: loop exit
PB: predicated region body
PF: predicated region fallthrough
CT: control target
= control target key end

     0   :  { %8 = vsyncpa [#allocation3], 0  ;;  %s846_s0 = inlined_call_operand.hbm [shape: bf16[32,512], index: 0, kind: input, shape index: {}]   ;;  %s847_s1 = inlined_call_operand.vmem [shape: bf16[48,32], index: 1, kind: input, shape index: {}]   ;;  %s848_s2 = inlined_call_operand.vmem [shape: bf16[8,48], index: 2, kind: input, shape index: {}]   ;;  %s849_s3 = inlined_call_operand.hbm [shape: f32[8,512], index: 3, kind: output, shape index: {}]  }
   0x1   :  { %10 = vsyncpa [#allocation3 + $0x1], 0 }
   0x2   :  { %11 = vsyncpa [#allocation4], 0 }
   0x3   :  { %13 = vsyncpa [#allocation4 + $0x1], 0  ;;  %s671_s12 = smov 0   ;;  %s673_s13 = smov 0  }
   0x4   :  { %s675_s14 = smov 0   ;;  %s677_s15 = smov 0  }
   0x5 LB: > { %s692_s16 = sadd.s32 4294967295, %s643_s15   ;;  %s461_s17 = sadd.s32 4294967294, %s643_s15   ;;  %s643_s15 = sphi %s677_s15, %s863_s15   ;;  %s639_s14 = sphi %s675_s14, %s862_s14   ;;  %s635_s13 = sphi %s673_s13, %s861_s13   ;;  %s631_s12 = sphi %s671_s12, %s860_s12  }
   0x6   : > { %s696_s18 = sadd.s32 1, %s643_s15   ;;  %s26_s19 = sadd.s32 1, %s639_s14 }
   0x7   : > { %s23_s20 = ssub.s32 %s643_s15, %s696_s18  ;;  %p33_p0 = scmp.ne.s32.totalorder %s639_s14, %s635_s13 }
   0x8   : > { %p24_p1 = scmp.eq.s32.totalorder %s23_s20, 0  ;;  %p34_p2 = scmp.eq.s32.totalorder %s643_s15, 0 }
   0x9   : > { %p39_p3 = scmp.ne.s32.totalorder %s635_s13, %s631_s12  ;;  %p40_p4 = scmp.eq.s32.totalorder %s692_s16, 0 }
   0xa   : > { %s708_s21 = scalar_select %p24_p1, %s639_s14, %s26_s19  }
   0xb   : > { %p710_p5 = por %p34_p2, %p33_p0  ;;  %p714_p6 = por %p40_p4, %p39_p3 }
   0xc   : > { %p105_p7 = scmp.eq.s32.totalorder %s692_s16, 1  ;;  %p111_p8 = scmp.eq.s32.totalorder %s461_s17, 1 }
   0xd   : > { %p500_p10 = scmp.lt.s32.totalorder %s643_s15, 2  ;;  %s137_s26 = sand.u32 1, %s639_s14  }
   0xe   : > { %p721_p11 = por %p105_p7, %p33_p0  ;;  %p725_p12 = por %p111_p8, %p39_p3 }
   0xf   : > { %s486_s27 = sshll.u32 %s643_s15, 7  ;;  %s464_s28 = sshll.u32 %s137_s26, 5 }
  0x10   : > { %s853_s24 = scalar_select %p721_p11, 1, 0 }
  0x11   : > { %s854_s25 = scalar_select %p725_p12, 1, 0 }
  0x12   : > { %s734_s4 = scalar_lea.hbm %s846_s0, %s486_s27  ;;  %s141_s5 = scalar_lea.vmem [#allocation2], %s464_s28 }
  0x13   : > { %s148_s6 = sshll.u32 %s141_s5, 4  ;;  %p738_p13 = pnand %p500_p10, %p710_p5  ;;  %s742_s6 = int_to_ptr.vmem [resolvable:$true] %s148_s6 }
  0x14   : > { %s745_s8 = scalar_lea.sflag [#allocation3], %s137_s26  ;;  %s547_s9 = scalar_lea.hbm %s734_s4, 512 }
  0x15   : > { %p548_p1 = scmp.ne.s32.totalorder %s734_s4, %s547_s9  ;;  %p549_p2 = pneg %p738_p13 }
  0x16   : > { %s552_s17 = scalar_lea.hbm %s846_s0, 1024  ;;  %p553_p5 = scmp.lt.u32.totalorder %s734_s4, %s846_s0 }
  0x17   : > { %p550_p3 = pnand %p549_p2, %p548_p1  ;;  %p554_p7 = scmp.lt.u32.totalorder %s552_s17, %s547_s9 }
  0x18   : > { %p556_p10 = scmp.lt.u32.totalorder %s547_s9, %s734_s4 }
  0x19   : > { %p551_p4 = pneg %p550_p3  ;;  %p555_p8 = por %p554_p7, %p553_p5 }
  0x1b   : > { %p557_p9 = por %p556_p10, %p555_p8 }
  0x1d   : > { %p558_p0 = pnand %p557_p9, %p551_p4 }
  0x1f   : > { %561 = shalt.err (!%p558_p0)
}
  0x20   : > { %s562_s22 = scalar_lea.vmem %s742_s6, 512  ;;  %s645_s26 = smov [#allocation2]  }
  0x21   : > { %p563_p1 = scmp.ne.s32.totalorder %s742_s6, %s562_s22  ;;  %s567_s27 = sshll.u32 %s645_s26, 4  ;;  %s568_s27 = int_to_ptr.vmem [resolvable:$false] %s567_s27 }
  0x22   : > { %s569_s28 = scalar_lea.vmem %s568_s27, 1024  ;;  %p570_p11 = scmp.lt.s32.totalorder %s742_s6, %s568_s27 }
  0x23   : > { %p565_p3 = pnand %p563_p1, %p549_p2  ;;  %p571_p5 = scmp.lt.s32.totalorder %s569_s28, %s562_s22 }
  0x25   : > { %p566_p12 = pneg %p565_p3  ;;  %p572_p7 = por %p571_p5, %p570_p11 }
  0x27   : > { %p573_p8 = pnand %p572_p7, %p566_p12 }
  0x29   : > { %576 = shalt.err (!%p573_p8)
}
  0x2a   : > { %s646_s29 = smov 256   ;;  %s647_s30 = smov 128  }
  0x2b   : > { %s648_s5 = smov 8   ;;  %p156_p9 = scmp.lt.s32.totalorder %s643_s15, 3 }
  0x2c   : > { %495 = dma.hbm_to_vmem [thread:$0]  (!%p738_p13), %s734_s4, 512, %s742_s6, %s745_s8, %s646_s29, %s647_s30, %s648_s5  }
  0x2d   : > { %p856_p0 = scmp.ge.s32.totalorder %s643_s15, 1 }
  0x2f   : > { %p157_p2 = pnand %p856_p0, %p156_p9 }
  0x30   : > { %s777_s9 = sand.u32 (!%p157_p2), 1, %s635_s13  }
  0x31   : > { %160 = sbr.rel (%p157_p2) target bundleno = 534 (0x216), region = 32  ;;  %s468_s10 = sshll.u32 (!%p157_p2), %s777_s9, 5 }
  0x32   : > { %s163_s11 = scalar_lea.sflag (!%p157_p2), [#allocation3], %s777_s9  ;;  %s166_s17 = scalar_lea.vmem (!%p157_p2), [#allocation2], %s468_s10 }
  0x38   : > { %622 = dma.done.wait (%p714_p6), %s163_s11, 512  }
  0x39   : > { %624 = vsyncadd (%p714_p6), %s163_s11, 4294966784  ;;  %v649_v0 = vmov 0   ;;  %v538_v1 = vld [vmem:[%s166_s17 + $0x4] ss:$8 sps:$4 sm:$0xff]   ;;  %v540_v2 = vld [vmem:[%s166_s17] ss:$8 sps:$4 sm:$0xff]  }
  0x3a   : > { %279 = vmatprep.mubr.bf16.mxu0 %v649_v0  ;;  %365 = vmatprep.mubr.bf16.mxu1 %v649_v0  ;;  %v541_v3 = vld [vmem:[%s166_s17 + $0x14] ss:$8 sps:$4 sm:$0xff]   ;;  %v543_v4 = vld [vmem:[%s166_s17 + $0x10] ss:$8 sps:$4 sm:$0xff]   ;;  %v544_v5 = vld [vmem:[%s847_s1] sm:$0xff]   ;;  %vm237_vm0 = vcmask 261120  }
  0x3b   : > { %247 = vmatprep.subr.bf16.mxu0 %v538_v1  ;;  %v545_v6 = vld [vmem:[%s847_s1 + $0x8] sm:$0xff]   ;;  %v546_v7 = vld [vmem:[%s847_s1 + $0x10] sm:$0xff]   ;;  %v322_v38 = vld [vmem:[%s848_s2] sm:$0xf]  ;;  %vm329_vm1 = vcmask 392192   ;;  %s469_s26 = sshll.u32 %s777_s9, 4 }
  0x3c   : > { %248 = vmatpush1.bf16.msra.mxu0 %v540_v2  ;;  %s188_s27 = scalar_lea.vmem [#allocation5], %s469_s26  ;;  %s487_s29 = sshll.u32 %s692_s16, 8 }
  0x3d   : > { %249 = vmatprep.subr.bf16.mxu0 %v541_v3  ;;  %s391_s28 = sshll.u32 %s188_s27, 4  ;;  %s804_s10 = scalar_lea.hbm %s849_s3, %s487_s29  ;;  %s799_s28 = int_to_ptr.vmem [resolvable:$true] %s391_s28 }
  0x3e   : > { %s377_s11 = scalar_lea.sflag [#allocation4], %s777_s9  ;;  %s577_s17 = scalar_lea.vmem %s799_s28, 256 }
  0x3f   : > { %p578_p6 = scmp.ne.s32.totalorder %s799_s28, %s577_s17  ;;  %p857_p11 = scmp.ne.s32.totalorder %s853_s24, 0 }
  0x40   : > { %250 = vmatpush1.bf16.msra.mxu0 %v543_v4  ;;  %s650_s16 = smov [#allocation5]  }
  0x41   : > { %p579_p12 = pnand %p578_p6, %p857_p11  ;;  %s581_s4 = sshll.u32 %s650_s16, 4  ;;  %s582_s4 = int_to_ptr.vmem [resolvable:$false] %s581_s4 }
  0x42   : > { %s583_s6 = scalar_lea.vmem %s582_s4, 512  ;;  %p584_p4 = scmp.lt.s32.totalorder %s799_s28, %s582_s4 }
  0x43   : > { %477 = vmatmul.mubr.msk.bf16.vlgmr.msra.gmra.mrb[0].mxu0 %vm237_vm0, %v544_v5  ;;  %p580_p13 = pneg %p579_p12  ;;  %p585_p10 = scmp.lt.s32.totalorder %s583_s6, %s577_s17 }
  0x44   : > { %289 = vmatprep.mubr.bf16.mxu0 %v649_v0 }
  0x45   : > { %p586_p1 = por %p585_p10, %p584_p4 }
  0x47   : > { %p587_p3 = pnand %p586_p1, %p580_p13 }
  0x4b   : > { %478 = vmatmul.mubr.msk.bf16.gmra.mrb[4].mxu0 %vm237_vm0, %v545_v6 }
  0x4c   : > { %299 = vmatprep.mubr.bf16.mxu0 %v649_v0 }
  0x53   : > { %479 = vmatmul.mubr.msk.bf16.gmra.mrb[8].mxu0 %vm237_vm0, %v546_v7 }
 0x116   : > { %v281_v8 = vpop.f32.mrb[0].mxu0 }
 0x117   : > { %v283_v9 = vpop.f32.mrb[1].mxu0  ;;  %v310_v11 = vmax.f32 %v281_v8, 0.0 }
 0x118   : > { %v285_v10 = vpop.f32.mrb[2].mxu0  ;;  %v311_v14 = vmax.f32 %v283_v9, 0.0 }
 0x119   : > { %v312_v12 = vmax.f32 %v285_v10, 0.0  ;;  %v287_v13 = vpop.f32.mrb[3].mxu0 }
 0x11a   : > { %v313_v15 = vmax.f32 %v287_v13, 0.0 }
 0x11b   : > { %v323_v16 = vpack.c.bf16 %v312_v12, %v310_v11 }
 0x11c   : > { %v324_v17 = vpack.c.bf16 %v313_v15, %v311_v14 }
 0x11e   : > { %v291_v18 = vpop.f32.mrb[4].mxu0  ;;  %333 = vmatprep.subr.bf16.mxu1 %v324_v17 }
 0x11f   : > { %v293_v19 = vpop.f32.mrb[5].mxu0  ;;  %334 = vmatpush1.bf16.msra.mxu1 %v323_v16  ;;  %v314_v21 = vmax.f32 %v291_v18, 0.0 }
 0x120   : > { %v295_v20 = vpop.f32.mrb[6].mxu0  ;;  %v315_v24 = vmax.f32 %v293_v19, 0.0 }
 0x121   : > { %v316_v22 = vmax.f32 %v295_v20, 0.0  ;;  %v297_v23 = vpop.f32.mrb[7].mxu0 }
 0x122   : > { %v317_v25 = vmax.f32 %v297_v23, 0.0 }
 0x123   : > { %v325_v26 = vpack.c.bf16 %v316_v22, %v314_v21 }
 0x124   : > { %v326_v27 = vpack.c.bf16 %v317_v25, %v315_v24 }
 0x126   : > { %v301_v28 = vpop.f32.mrb[8].mxu0  ;;  %335 = vmatprep.subr.bf16.mxu1 %v326_v27 }
 0x127   : > { %v303_v29 = vpop.f32.mrb[9].mxu0  ;;  %336 = vmatpush1.bf16.msra.mxu1 %v325_v26  ;;  %v318_v31 = vmax.f32 %v301_v28, 0.0 }
 0x128   : > { %v305_v30 = vpop.f32.mrb[10].mxu0  ;;  %v319_v34 = vmax.f32 %v303_v29, 0.0 }
 0x129   : > { %v320_v32 = vmax.f32 %v305_v30, 0.0  ;;  %v307_v33 = vpop.f32.mrb[11].mxu0 }
 0x12a   : > { %v321_v35 = vmax.f32 %v307_v33, 0.0 }
 0x12b   : > { %v327_v36 = vpack.c.bf16 %v320_v32, %v318_v31 }
 0x12c   : > { %v328_v37 = vpack.c.bf16 %v321_v35, %v319_v34 }
 0x12e   : > { %337 = vmatprep.subr.bf16.mxu1 %v328_v37 }
 0x12f   : > { %338 = vmatpush1.bf16.msra.mxu1 %v327_v36 }
 0x132   : > { %480 = vmatmul.mubr.msk.bf16.vlgmr.msra.gmra.mrb[0].mxu1 %vm329_vm1, %v322_v38 }
 0x205   : > { %v367_v39 = vpop.f32.mrb[0].mxu1 }
 0x206   : > { %374 = vst [vmem:[%s188_s27] sm:$0xff] %v367_v39  ;;  %v369_v40 = vpop.f32.mrb[1].mxu1 }
 0x207   : > { %375 = vst [vmem:[%s188_s27 + $0x8] sm:$0xff] %v369_v40  ;;  %v371_v41 = vpop.f32.mrb[2].mxu1 }
 0x208   : > { %v372_v42 = vpop.f32.mrb[3].mxu1 }
 0x209   : > { %590 = shalt.err (!%p587_p3)
}
 0x20a   : > { %s591_s9 = scalar_lea.hbm %s804_s10, 256  ;;  %s595_s8 = scalar_lea.hbm %s849_s3, 512 }
 0x20b   : > { %p592_p5 = scmp.ne.s32.totalorder %s804_s10, %s591_s9  ;;  %p596_p9 = scmp.lt.u32.totalorder %s804_s10, %s849_s3 }
 0x20c   : > { %p597_p0 = scmp.lt.u32.totalorder %s595_s8, %s591_s9  ;;  %p599_p6 = scmp.lt.u32.totalorder %s591_s9, %s804_s10 }
 0x20d   : > { %p593_p7 = pnand %p592_p5, %p857_p11 }
 0x20e   : > { %p598_p2 = por %p597_p0, %p596_p9 }
 0x20f   : > { %p594_p8 = pneg %p593_p7 }
 0x210   : > { %p600_p12 = por %p599_p6, %p598_p2 }
 0x212   : > { %p601_p13 = pnand %p600_p12, %p594_p8 }
 0x214   : > { %604 = shalt.err (!%p601_p13)
}
 0x215   : > { %490 = dma.vmem_to_hbm [thread:$0]  (%p857_p11), %s799_s28, 256, %s804_s10, %s377_s11  }
 0x216 PF: > { %s403_s22 = sand.u32 1, %s631_s12   ;;  %p858_p4 = scmp.ne.s32.totalorder %s854_s25, 0 }
 0x217   : > { %p859_p10 = scmp.ge.s32.totalorder %s643_s15, 2  ;;  %s404_s26 = scalar_lea.sflag [#allocation4], %s403_s22 }
 0x219   : > { %p497_p1 = pnand %p859_p10, %p858_p4 }
 0x21b   : > { %626 = dma.done.wait (!%p497_p1), %s404_s26, 256  }
 0x21c   : > { %628 = vsyncadd (!%p497_p1), %s404_s26, 4294967040  ;;  %p16_p3 = scmp.ge.s32.totalorder %s696_s18, 4   ;;  %s860_s12 = smov %s635_s13 }
 0x21d   : > { %s861_s13 = smov %s639_s14  ;;  %s862_s14 = smov %s708_s21 }
 0x21e   : > { %s863_s15 = smov %s696_s18  ;;  %18 = sbr.rel (!%p16_p3) target bundleno = 5 (0x5), region = 77 }
 0x225   :  { %409 = vsyncpa [#allocation3], 1 }
 0x226   :  { %411 = vsyncpa [#allocation3 + $0x1], 1 }
 0x227   :  { %412 = vsyncpa [#allocation4], 1 }
 0x228   :  { %414 = vsyncpa [#allocation4 + $0x1], 1 }

</bundles_post_ra>
